<compile_context>
chip_gen: v7x
topology: tpu7x:2x2x1
jax: 0.10.0
libtpu: 0.0.40
codegen_flags: <defaults>
</compile_context>

<pallas_src>
import jax
import jax.numpy as jnp
from jax.experimental import pallas as pl
from jax.experimental.pallas import tpu as pltpu


# ----------------------------- Pallas kernel --------------------------------
def _linear_relu_kernel(x_ref, w_ref, b_ref, o_ref, acc_ref):
    # x_ref: (tm, tk) bf16   w_ref: (tk, tn) bf16   b_ref: (1, tn) f32
    # o_ref: (tm, tn) out dtype      acc_ref: (tm, tn) f32 VMEM scratch
    k = pl.program_id(2)

    @pl.when(k == 0)
    def _():
        acc_ref[...] = jnp.zeros_like(acc_ref)

    # bf16 x bf16 -> fp32 accumulate on the MXU.
    acc_ref[...] += jnp.dot(
        x_ref[...], w_ref[...], preferred_element_type=jnp.float32
    )

    @pl.when(k == pl.num_programs(2) - 1)
    def _():
        # fp32 epilogue: bias broadcast over rows, ReLU, then downcast.
        out = acc_ref[...] + b_ref[...]
        o_ref[...] = jnp.maximum(out, 0.0).astype(o_ref.dtype)


def _round_up(x, m):
    return ((x + m - 1) // m) * m


def linear_relu_pallas(x, w, b, *, tm=128, tn=128, tk=256):
    """out = relu(x @ w + b), tiled (M, N, K) Pallas TPU kernel.

    x: (B, D_in) float, w: (D_in, D_out) float, b: (D_out,) float.
    Inputs are cast to bf16 for the MXU; accumulation/epilogue in fp32.
    Shapes are zero-padded to tile multiples and the result is sliced back.
    """
    B, D_in = x.shape
    D_in_w, D_out = w.shape
    assert D_in == D_in_w, "x / w contraction dims must match"

    out_dtype = x.dtype

    # bf16 inputs for the MXU (tm=128 keeps the sublane packing happy: 16 | tm).
    x_bf = x.astype(jnp.bfloat16)
    w_bf = w.astype(jnp.bfloat16)
    b_f32 = b.reshape(1, D_out).astype(jnp.float32)

    # Pad every dim to its tile multiple -> lane-dense, unmasked stores and
    # fully packed MXU tiles.  Zero padding is exact for matmul + bias + ReLU.
    Bp = _round_up(B, tm)
    Kp = _round_up(D_in, tk)
    Np = _round_up(D_out, tn)
    if Bp != B or Kp != D_in:
        x_bf = jnp.pad(x_bf, ((0, Bp - B), (0, Kp - D_in)))
    if Kp != D_in or Np != D_out:
        w_bf = jnp.pad(w_bf, ((0, Kp - D_in), (0, Np - D_out)))
    if Np != D_out:
        b_f32 = jnp.pad(b_f32, ((0, 0), (0, Np - D_out)))

    grid = (Bp // tm, Np // tn, Kp // tk)

    out = pl.pallas_call(
        _linear_relu_kernel,
        out_shape=jax.ShapeDtypeStruct((Bp, Np), out_dtype),
        grid_spec=pltpu.PrefetchScalarGridSpec(
            num_scalar_prefetch=0,
            grid=grid,
            in_specs=[
                pl.BlockSpec((tm, tk), lambda i, j, k: (i, k)),   # x
                pl.BlockSpec((tk, tn), lambda i, j, k: (k, j)),   # w
                pl.BlockSpec((1, tn), lambda i, j, k: (0, j)),    # bias
            ],
            out_specs=pl.BlockSpec((tm, tn), lambda i, j, k: (i, j)),
            scratch_shapes=[pltpu.VMEM((tm, tn), jnp.float32)],
        ),
        compiler_params=pltpu.CompilerParams(
            # M, N parallel (megacore sharding on v7x), K is the reduction.
            dimension_semantics=("parallel", "parallel", "arbitrary"),
            # Tiles are small (<= 128x256 bf16 + 128x128 f32 acc), comfortably
            # inside even v5e's 16 MiB scoped VMEM default -> no limit override.
        ),
    )(x_bf, w_bf, b_f32)

    if Bp != B or Np != D_out:
        out = out[:B, :D_out]
    return out


# ------------------------ JAX-side module + wrapper --------------------------
class LinearReluModule:
    """Inner module: deterministic Linear + ReLU whose forward runs in Pallas."""

    def __init__(self, d_in, d_out, key):
        kw, kb = jax.random.split(key)
        bound = 1.0 / (d_in ** 0.5)
        self.weight = jax.random.uniform(kw, (d_in, d_out), jnp.float32, -bound, bound)
        self.bias = jax.random.uniform(kb, (d_out,), jnp.float32, -bound, bound)

    def forward(self, x):
        return linear_relu_pallas(x, self.weight, self.bias)


class ModuleWrapper:
    """A wrapper module that calls a particular method in its forward pass."""

    def __init__(self, module, method_name):
        self.module = module
        self.method_name = method_name

    def __call__(self, *args, **kwargs):
        return self.forward(*args, **kwargs)

    def forward(self, *args, **kwargs):
        # Exact semantics of the PyTorch ModuleWrapper: dispatch to the named method.
        method = getattr(self.module, self.method_name)
        return method(*args, **kwargs)


# ---------------------------------- main -------------------------------------
if __name__ == "__main__":
    key = jax.random.PRNGKey(0)
    k_inp, k_mod = jax.random.split(key)

    # 128/256-aligned shapes: lane-dense output tiles, packed MXU, real grid
    # (grid = (2, 2, 2) at tm=128, tn=128, tk=256).
    B, D_in, D_out = 256, 512, 256
    x = jax.random.normal(k_inp, (B, D_in), jnp.float32)

    inner = LinearReluModule(D_in, D_out, k_mod)
    wrapped = ModuleWrapper(inner, "forward")

    out = wrapped(x)
    out = jax.block_until_ready(out)

    # Correctness check: reference uses the same bf16-cast operands (the kernel
    # casts x/w to bf16 for the MXU) and a full-precision fp32 matmul.
    x_ref = x.astype(jnp.bfloat16).astype(jnp.float32)
    w_ref = inner.weight.astype(jnp.bfloat16).astype(jnp.float32)
    ref = jnp.maximum(
        jnp.dot(x_ref, w_ref, precision=jax.lax.Precision.HIGHEST) + inner.bias, 0.0
    )
    assert out.shape == (B, D_out)
    assert jnp.allclose(out, ref, atol=2e-3, rtol=2e-3)

    print("KERNEL_OK")
</pallas_src>

<mosaic_0001>
module attributes {stable_mosaic.version = 11 : i64} {
  func.func @_linear_relu_kernel(%arg0: i32, %arg1: i32, %arg2: i32, %arg3: memref<128x256xbf16, #tpu.memory_space<vmem>>, %arg4: memref<256x128xbf16, #tpu.memory_space<vmem>>, %arg5: memref<1x128xf32, #tpu.memory_space<vmem>>, %arg6: memref<128x128xf32, #tpu.memory_space<vmem>>, %arg7: memref<128x128xf32, #tpu.memory_space<vmem>>) attributes {dimension_semantics = [#tpu.dimension_semantics<parallel>, #tpu.dimension_semantics<parallel>, #tpu.dimension_semantics<arbitrary>], iteration_bounds = array<i64: 2, 2, 2>, scalar_prefetch = 0 : i64, scratch_operands = 1 : i64, tpu.core_type = #tpu.core_type<tc>, window_params = [{transform_indices = @transform_0, window_bounds = array<i64: 128, 256>}, {transform_indices = @transform_1, window_bounds = array<i64: 256, 128>}, {transform_indices = @transform_2, window_bounds = array<i64: 1, 128>}, {transform_indices = @transform_3, window_bounds = array<i64: 128, 128>}]} {
    %c0_i32 = arith.constant 0 : i32
    %0 = arith.cmpi eq, %arg2, %c0_i32 : i32
    %1 = arith.extui %0 : i1 to i32
    %c0_i32_0 = arith.constant 0 : i32
    %2 = arith.cmpi ne, %1, %c0_i32_0 : i32
    scf.if %2 {
      %cst_9 = arith.constant 0.000000e+00 : f32
      %12 = vector.broadcast %cst_9 : f32 to vector<128x128xf32>
      %c0_10 = arith.constant 0 : index
      %c0_11 = arith.constant 0 : index
      %13 = vector.load %arg7[%c0_10, %c0_11] : memref<128x128xf32, #tpu.memory_space<vmem>>, vector<128x128xf32>
      tpu.vector_store %arg7[%c0_10, %c0_11], %12 {strides = array<i32>} : memref<128x128xf32, #tpu.memory_space<vmem>>, vector<128x128xf32>,
    } else {
    }
    %c0 = arith.constant 0 : index
    %c0_1 = arith.constant 0 : index
    %3 = vector.load %arg7[%c0, %c0_1] : memref<128x128xf32, #tpu.memory_space<vmem>>, vector<128x128xf32>
    %c0_2 = arith.constant 0 : index
    %c0_3 = arith.constant 0 : index
    %4 = vector.load %arg3[%c0_2, %c0_3] : memref<128x256xbf16, #tpu.memory_space<vmem>>, vector<128x256xbf16>
    %c0_4 = arith.constant 0 : index
    %c0_5 = arith.constant 0 : index
    %5 = vector.load %arg4[%c0_4, %c0_5] : memref<256x128xbf16, #tpu.memory_space<vmem>>, vector<256x128xbf16>
    %cst = arith.constant dense<0.000000e+00> : vector<128x128xf32>
    %6 = tpu.matmul %4, %5, %cst {dimension_numbers = #tpu.dot_dimension_numbers<[1], [0], [0], [1], [0, 0, 1, 1], [], []>} : vector<128x256xbf16>, vector<256x128xbf16>, vector<128x128xf32> -> vector<128x128xf32>
    %7 = arith.addf %3, %6 : vector<128x128xf32>
    %c0_6 = arith.constant 0 : index
    %c0_7 = arith.constant 0 : index
    %8 = vector.load %arg7[%c0_6, %c0_7] : memref<128x128xf32, #tpu.memory_space<vmem>>, vector<128x128xf32>
    tpu.vector_store %arg7[%c0_6, %c0_7], %7 {strides = array<i32>} : memref<128x128xf32, #tpu.memory_space<vmem>>, vector<128x128xf32>,
    %c1_i32 = arith.constant 1 : i32
    %9 = arith.cmpi eq, %arg2, %c1_i32 : i32
    %10 = arith.extui %9 : i1 to i32
    %c0_i32_8 = arith.constant 0 : i32
    %11 = arith.cmpi ne, %10, %c0_i32_8 : i32
    scf.if %11 {
      %c0_9 = arith.constant 0 : index
      %c0_10 = arith.constant 0 : index
      %12 = vector.load %arg7[%c0_9, %c0_10] : memref<128x128xf32, #tpu.memory_space<vmem>>, vector<128x128xf32>
      %c0_11 = arith.constant 0 : index
      %c0_12 = arith.constant 0 : index
      %13 = vector.load %arg5[%c0_11, %c0_12] : memref<1x128xf32, #tpu.memory_space<vmem>>, vector<1x128xf32>
      %14 = vector.broadcast %13 : vector<1x128xf32> to vector<128x128xf32>
      %15 = arith.addf %12, %14 : vector<128x128xf32>
      %cst_13 = arith.constant 0.000000e+00 : f32
      %16 = vector.broadcast %cst_13 : f32 to vector<128x128xf32>
      %17 = arith.maximumf %15, %16 : vector<128x128xf32>
      %c0_14 = arith.constant 0 : index
      %c0_15 = arith.constant 0 : index
      %18 = vector.load %arg6[%c0_14, %c0_15] : memref<128x128xf32, #tpu.memory_space<vmem>>, vector<128x128xf32>
      tpu.vector_store %arg6[%c0_14, %c0_15], %17 {strides = array<i32>} : memref<128x128xf32, #tpu.memory_space<vmem>>, vector<128x128xf32>,
    } else {
    }
    return
  }
  func.func @transform_0(%arg0: i32, %arg1: i32, %arg2: i32) -> (i32, i32) {
    %c0_i32 = arith.constant 0 : i32
    return %arg0, %arg2 : i32, i32
  }
  func.func @transform_1(%arg0: i32, %arg1: i32, %arg2: i32) -> (i32, i32) {
    %c0_i32 = arith.constant 0 : i32
    return %arg2, %arg1 : i32, i32
  }
  func.func @transform_2(%arg0: i32, %arg1: i32, %arg2: i32) -> (i32, i32) {
    %c0_i32 = arith.constant 0 : i32
    %c0_i32_0 = arith.constant 0 : i32
    return %c0_i32, %arg1 : i32, i32
  }
  func.func @transform_3(%arg0: i32, %arg1: i32, %arg2: i32) -> (i32, i32) {
    %c0_i32 = arith.constant 0 : i32
    return %arg0, %arg1 : i32, i32
  }
}

</mosaic_0001>

<bundles_post_ra>
// kernel: tpu_custom_call.1
= control target key start
LH: loop header
LB: loop body
LE: loop exit
PB: predicated region body
PF: predicated region fallthrough
CT: control target
= control target key end

     0   :  { %s1944_s0 = inlined_call_operand.hbm [shape: bf16[256,512], index: 0, kind: input, shape index: {}]   ;;  %s1945_s1 = inlined_call_operand.hbm [shape: bf16[512,256], index: 1, kind: input, shape index: {}]   ;;  %s1946_s2 = inlined_call_operand.vmem [shape: f32[1,256], index: 2, kind: input, shape index: {}]   ;;  %s1947_s3 = inlined_call_operand.hbm [shape: f32[256,256], index: 3, kind: output, shape index: {}]  }
   0x1   :  { %1962 = sst [smem:[#allocation19_spill]] %s1944_s0 }
   0x2   :  { %1963 = sst [smem:[#allocation20_spill]] %s1945_s1 }
   0x3   :  { %1964 = sst [smem:[#allocation21_spill]] %s1946_s2 }
   0x4   :  { %1965 = sst [smem:[#allocation22_spill]] %s1947_s3 }
   0x5   :  { %8 = vsyncpa [#allocation4], 0 }
   0x6   :  { %10 = vsyncpa [#allocation4 + $0x1], 0 }
   0x7   :  { %11 = vsyncpa [#allocation7], 0 }
   0x8   :  { %13 = vsyncpa [#allocation7 + $0x1], 0 }
   0x9   :  { %14 = vsyncpa [#allocation5], 0 }
   0xa   :  { %16 = vsyncpa [#allocation5 + $0x1], 0  ;;  %s1484_s12 = smov 0   ;;  %s1486_s13 = smov 0  }
   0xb   :  { %s1488_s14 = smov 0   ;;  %s1490_s15 = smov 0  }
   0xc   :  { %s1492_s16 = smov 0   ;;  %s1494_s17 = smov 0  }
   0xd   :  { %s1496_s18 = smov 0   ;;  %s1498_s19 = smov 0  }
   0xe   :  { %s1500_s20 = smov 0   ;;  %s1502_s21 = smov 0  }
   0xf   :  { %s1504_s22 = smov 0   ;;  %s1506_s23 = smov 0  }
  0x10   :  { %s1508_s24 = smov 0   ;;  %s1510_s25 = smov 0  }
  0x11   :  { %s1512_s26 = smov 0   ;;  %s1514_s27 = smov 0  }
  0x12 LB: > { %1966 = sst [smem:[#allocation12_spill]] %s1426_s21  ;;  %s887_s28 = sadd.s32 4294967295, %s1450_s27   ;;  %s1450_s27 = sphi %s1514_s27, %s22_s27   ;;  %s1446_s26 = sphi %s1512_s26, %s2026_s26   ;;  %s1442_s25 = sphi %s1510_s25, %s2025_s25   ;;  %s1438_s24 = sphi %s1508_s24, %s2024_s24   ;;  %s1434_s23 = sphi %s1506_s23, %s2023_s23   ;;  %s1430_s22 = sphi %s1504_s22, %s2022_s22   ;;  %s1426_s21 = sphi %s1502_s21, %s2021_s21   ;;  %s1422_s20 = sphi %s1500_s20, %s2020_s20   ;;  %s1418_s19 = sphi %s1498_s19, %s2019_s19   ;;  %s1414_s18 = sphi %s1496_s18, %s2018_s18   ;;  %s1410_s17 = sphi %s1494_s17, %s2017_s17   ;;  %s1406_s16 = sphi %s1492_s16, %s2016_s16   ;;  %s1402_s15 = sphi %s1490_s15, %s2015_s15   ;;  %s1398_s14 = sphi %s1488_s14, %s2014_s14   ;;  %s1394_s13 = sphi %s1486_s13, %s2013_s13   ;;  %s1390_s12 = sphi %s1484_s12, %s2012_s12  }
  0x13   : > { %1967 = sst [smem:[#allocation13_spill]] %s1430_s22  ;;  %s34_s29 = sadd.s32 1, %s1438_s24 }
  0x14   : > { %1968 = sst [smem:[#allocation14_spill]] %s1434_s23  ;;  %p1564_p0 = scmp.ge.s32.totalorder %s34_s29, 2 }
  0x15   : > { %p57_p1 = scmp.ne.s32.totalorder %s1422_s20, %s1418_s19  ;;  %p1954_p2 = scmp.eq.s32.totalorder %s1450_s27, 0 }
  0x16   : > { %s2028_s29 = smov (%p1564_p0, %s34_s29), 0  ;;  %p63_p3 = scmp.ne.s32.totalorder %s1418_s19, %s1414_s18 }
  0x17   : > { %1970 = sst [smem:[#allocation15_spill]] %s2028_s29  ;;  %s1580_s6 = ssub.s32 %s1438_s24, %s2028_s29 }
  0x18   : > { %p1582_p4 = scmp.eq.s32.totalorder %s887_s28, 0  ;;  %p1588_p5 = por %p1954_p2, %p57_p1 }
  0x19   : > { %p1592_p6 = scmp.eq.s32.totalorder %s887_s28, 7  ;;  %p1953_p8 = scmp.lt.s32.totalorder %s1450_s27, 8 }
  0x1a   : > { %s1971_s7 = scalar_select %p1582_p4, 1, 0 }
  0x1b   : > { %s1973_s9 = scalar_select %p1592_p6, 1, 0 }
  0x1c   : > { %p1598_p7 = por %p1582_p4, %p63_p3  ;;  %s169_s11 = sand.u32 1, %s1422_s20  }
  0x1d   : > { %s891_s18 = sshll.u32 %s169_s11, 7  ;;  %s893_s5 = sshll.u32 %s1438_s24, 1 }
  0x1e   : > { %s1974_s10 = scalar_select %p1598_p7, 1, 0 }
  0x1f   : > { %s945_s4 = sshll.u32 %s1446_s26, 6  ;;  %s173_s29 = scalar_lea.vmem [#allocation3], %s891_s18 }
  0x20   : > { %1975 = sst [smem:[#allocation16_spill]] %s1974_s10  ;;  %s183_s3 = sshll.u32 %s173_s29, 4  ;;  %s1606_s3 = int_to_ptr.vmem [resolvable:$true] %s183_s3 }
  0x21   : > { %s180_s23 = sadd.s32 %s945_s4, %s893_s5  ;;  %p1612_p9 = pnand %p1953_p8, %p1588_p5 }
  0x22   : > { %s895_s21 = sshll.u32 %s180_s23, 6  ;;  %s1977_s0 = sld [smem:[#allocation19_spill]] }
  0x23   : > { %s1622_s29 = scalar_lea.sflag [#allocation4], %s169_s11  ;;  %p1226_p12 = pneg %p1612_p9 }
  0x28   : > { %s1619_s10 = scalar_lea.hbm %s1977_s0, %s895_s21  ;;  %s1229_s21 = scalar_lea.hbm %s1977_s0, 8192 }
  0x29   : > { %s1224_s23 = scalar_lea.hbm %s1619_s10, 2048  ;;  %p1230_p3 = scmp.lt.u32.totalorder %s1619_s10, %s1977_s0 }
  0x2a   : > { %p1225_p11 = scmp.ne.s32.totalorder %s1619_s10, %s1224_s23  ;;  %p1231_p5 = scmp.lt.u32.totalorder %s1229_s21, %s1224_s23 }
  0x2b   : > { %p1233_p2 = scmp.lt.u32.totalorder %s1224_s23, %s1619_s10 }
  0x2c   : > { %p1227_p13 = pnand %p1226_p12, %p1225_p11  ;;  %p1232_p8 = por %p1231_p5, %p1230_p3 }
  0x2e   : > { %p1228_p1 = pneg %p1227_p13  ;;  %p1234_p10 = por %p1233_p2, %p1232_p8 }
  0x30   : > { %p1235_p7 = pnand %p1234_p10, %p1228_p1 }
  0x32   : > { %1238 = shalt.err (!%p1235_p7)
}
  0x33   : > { %s1239_s8 = scalar_lea.vmem %s1606_s3, 2048  ;;  %s1452_s11 = smov [#allocation3]  }
  0x34   : > { %p1240_p11 = scmp.ne.s32.totalorder %s1606_s3, %s1239_s8  ;;  %s1244_s18 = sshll.u32 %s1452_s11, 4  ;;  %s1245_s18 = int_to_ptr.vmem [resolvable:$false] %s1244_s18 }
  0x35   : > { %s1246_s2 = scalar_lea.vmem %s1245_s18, 4096  ;;  %p1247_p4 = scmp.lt.s32.totalorder %s1606_s3, %s1245_s18 }
  0x36   : > { %p1242_p13 = pnand %p1240_p11, %p1226_p12  ;;  %p1248_p3 = scmp.lt.s32.totalorder %s1246_s2, %s1239_s8 }
  0x38   : > { %p1243_p6 = pneg %p1242_p13  ;;  %p1249_p5 = por %p1248_p3, %p1247_p4 }
  0x3a   : > { %p1250_p2 = pnand %p1249_p5, %p1243_p6 }
  0x3c   : > { %1253 = shalt.err (!%p1250_p2)
}
  0x3d   : > { %s1453_s23 = smov 256   ;;  %s1957_s22 = smov 128  }
  0x3e   : > { %s1455_s21 = smov 8   ;;  %p220_p4 = scmp.lt.s32.totalorder %s1450_s27, 9 }
  0x3f   : > { %1037 = dma.hbm_to_vmem [thread:$0]  (!%p1612_p9), %s1619_s10, 2048, %s1606_s3, %s1622_s29, %s1453_s23, %s1957_s22, %s1455_s21  }
  0x40   : > { %p1978_p6 = scmp.ge.s32.totalorder %s1450_s27, 1  ;;  %s888_s5 = sadd.s32 4294967294, %s1450_s27  }
  0x41   : > { %s37_s8 = sadd.s32 1, %s1442_s25  ;;  %s78_s11 = sadd.s32 1, %s1410_s17 }
  0x42   : > { %p1654_p7 = pnand %p1978_p6, %p220_p4  ;;  %s2030_s8 = smov (!%p1564_p0, %s37_s8), %s1442_s25 }
  0x43   : > { %p85_p8 = scmp.ne.s32.totalorder %s1410_s17, %s1406_s16  ;;  %p39_p10 = scmp.ge.s32.totalorder %s2030_s8, 2 }
  0x44   : > { %p91_p9 = scmp.ne.s32.totalorder %s1406_s16, %s1402_s15  ;;  %p1980_p12 = scmp.eq.s32.totalorder %s1450_s27, 0 }
  0x45   : > { %s132_s10 = sadd.s32 1, %s1398_s14  ;;  %s2032_s8 = smov (%p39_p10, %s2030_s8), 0 }
  0x46   : > { %p1670_p1 = por %p85_p8, %p1980_p12  ;;  %1982 = sst [smem:[#allocation17_spill]] %s2032_s8 }
  0x47   : > { %s1983_s28 = sadd.s32 1, %s1446_s26  ;;  %s74_s30 = ssub.s32 %s1442_s25, %s2032_s8 }
  0x48   : > { %s2034_s28 = smov (!%p39_p10, %s1983_s28), %s1446_s26  ;;  %p1984_p0 = scmp.ne.s32.totalorder %s1971_s7, 0 }
  0x49   : > { %p43_p13 = scmp.ge.s32.totalorder %s2034_s28, 2  ;;  %s75_s15 = sor.u32 %s74_s30, %s1580_s6 }
  0x4a   : > { %p1684_p11 = por %p91_p9, %p1984_p0  ;;  %p76_p3 = scmp.eq.s32.totalorder %s75_s15, 0 }
  0x4b   : > { %p142_p5 = scmp.ne.s32.totalorder %s1398_s14, %s1394_s13  ;;  %s2036_s28 = smov (%p43_p13, %s2034_s28), 0 }
  0x4c   : > { %s1985_s29 = scalar_select %p1684_p11, 1, 0 }
  0x4d   : > { %1986 = sst [smem:[#allocation18_spill]] %s2036_s28  ;;  %s45_s7 = ssub.s32 %s1446_s26, %s2036_s28 }
  0x4e   : > { %s1694_s18 = scalar_select %p76_p3, %s1410_s17, %s78_s11  }
  0x4f   : > { %p1987_p2 = scmp.ne.s32.totalorder %s1973_s9, 0  ;;  %s47_s23 = sor.u32 %s1580_s6, %s45_s7 }
  0x50   : > { %s129_s21 = sor.u32 %s74_s30, %s45_s7  ;;  %p48_p6 = scmp.eq.s32.totalorder %s47_s23, 0 }
  0x51   : > { %p1700_p4 = por %p1987_p2, %p142_p5  ;;  %p130_p8 = scmp.eq.s32.totalorder %s129_s21, 0 }
  0x52   : > { %p148_p10 = scmp.ne.s32.totalorder %s1394_s13, %s1390_s12  ;;  %p149_p9 = scmp.eq.s32.totalorder %s888_s5, 7 }
  0x53   : > { %s1988_s2 = scalar_select %p1700_p4, 1, 0 }
  0x54   : > { %s1989_s15 = sadd.s32 1, %s1422_s20  ;;  %p1715_p12 = por %p149_p9, %p148_p10 }
  0x55   : > { %s1710_s22 = scalar_select %p48_p6, %s1422_s20, %s1989_s15  }
  0x56   : > { %s1713_s0 = scalar_select %p130_p8, %s1398_s14, %s132_s10  }
  0x57   : > { %s1990_s11 = scalar_select %p1715_p12, 1, 0 }
  0x58   : > { %s193_s9 = sand.u32 1, %s1410_s17   ;;  %s946_s8 = sshll.u32 %s1438_s24, 6 }
  0x59   : > { %s896_s28 = sshll.u32 %s193_s9, 7  ;;  %s203_s6 = sadd.s32 %s1442_s25, %s946_s8 }
  0x5a   : > { %s197_s30 = scalar_lea.vmem [#allocation6], %s896_s28  ;;  %s899_s23 = sshll.u32 %s203_s6, 6 }
  0x5b   : > { %s206_s7 = sshll.u32 %s197_s30, 4  ;;  %s1991_s1 = sld [smem:[#allocation20_spill]]  ;;  %s1722_s7 = int_to_ptr.vmem [resolvable:$true] %s206_s7 }
  0x5c   : > { %p1992_p0 = scmp.lt.s32.totalorder %s1450_s27, 8  ;;  %s1737_s8 = scalar_lea.sflag [#allocation7], %s193_s9 }
  0x5e   : > { %p1733_p13 = pnand %p1992_p0, %p1670_p1 }
  0x60   : > { %p1256_p5 = pneg %p1733_p13 }
  0x61   : > { %s1727_s15 = scalar_lea.hbm %s1991_s1, %s899_s23  ;;  %s1259_s30 = scalar_lea.hbm %s1991_s1, 8192 }
  0x62   : > { %s1254_s28 = scalar_lea.hbm %s1727_s15, 2048  ;;  %p1260_p1 = scmp.lt.u32.totalorder %s1727_s15, %s1991_s1 }
  0x63   : > { %p1255_p3 = scmp.ne.s32.totalorder %s1727_s15, %s1254_s28  ;;  %p1261_p8 = scmp.lt.u32.totalorder %s1259_s30, %s1254_s28 }
  0x64   : > { %p1263_p9 = scmp.lt.u32.totalorder %s1254_s28, %s1727_s15 }
  0x65   : > { %p1257_p2 = pnand %p1256_p5, %p1255_p3  ;;  %p1262_p10 = por %p1261_p8, %p1260_p1 }
  0x67   : > { %p1258_p6 = pneg %p1257_p2  ;;  %p1264_p0 = por %p1263_p9, %p1262_p10 }
  0x69   : > { %p1265_p12 = pnand %p1264_p0, %p1258_p6 }
  0x6b   : > { %1268 = shalt.err (!%p1265_p12)
}
  0x6c   : > { %s1269_s9 = scalar_lea.vmem %s1722_s7, 2048  ;;  %s1456_s5 = smov [#allocation6]  }
  0x6d   : > { %p1270_p3 = scmp.ne.s32.totalorder %s1722_s7, %s1269_s9  ;;  %s1274_s3 = sshll.u32 %s1456_s5, 4  ;;  %s1275_s3 = int_to_ptr.vmem [resolvable:$false] %s1274_s3 }
  0x6e   : > { %s1276_s6 = scalar_lea.vmem %s1275_s3, 4096  ;;  %p1277_p11 = scmp.lt.s32.totalorder %s1722_s7, %s1275_s3 }
  0x6f   : > { %p1272_p2 = pnand %p1270_p3, %p1256_p5  ;;  %p1278_p1 = scmp.lt.s32.totalorder %s1276_s6, %s1269_s9 }
  0x71   : > { %p1273_p4 = pneg %p1272_p2  ;;  %p1279_p8 = por %p1278_p1, %p1277_p11 }
  0x73   : > { %p1280_p10 = pnand %p1279_p8, %p1273_p4 }
  0x75   : > { %1283 = shalt.err (!%p1280_p10)
}
  0x76   : > { %s1457_s28 = smov 64   ;;  %s1458_s30 = smov 4  }
  0x77   : > { %s1994_s23 = smov 128   ;;  %224 = sbr.rel (%p1654_p7) target bundleno = 472 (0x1d8), region = 32 }
  0x78   : > { %1040 = dma.hbm_to_vmem [thread:$0]  (!%p1733_p13), %s1727_s15, 2048, %s1722_s7, %s1737_s8, %s1994_s23, %s1457_s28, %s1458_s30  }
  0x79   : > { %s1995_s21 = sld [smem:[#allocation16_spill]] (!%p1654_p7)  ;;  %s226_s5 = sand.u32 (!%p1654_p7), 1, %s1418_s19  }
  0x7a   : > { %s901_s3 = sshll.u32 (!%p1654_p7), %s226_s5, 7  ;;  %s227_s9 = scalar_lea.sflag (!%p1654_p7), [#allocation4], %s226_s5 }
  0x7b   : > { %s1769_s6 = scalar_lea.vmem (!%p1654_p7), [#allocation3], %s901_s3 }
  0x7f   : > { %p1996_p11 = scmp.ne.s32.totalorder %s1995_s21, 0 }
  0x81   : > { %1377 = dma.done.wait (%p1996_p11), %s227_s9, 2048  }
  0x82   : > { %1379 = vsyncadd (%p1996_p11), %s227_s9, 4294965248  ;;  %s235_s10 = sand.u32 1, %s1406_s16   ;;  %p1997_p7 = scmp.ne.s32.totalorder %s1985_s29, 0 }
  0x83   : > { %s902_s1 = sshll.u32 %s235_s10, 7  ;;  %s236_s7 = scalar_lea.sflag [#allocation7], %s235_s10 }
  0x84   : > { %s1776_s15 = scalar_lea.vmem [#allocation6], %s902_s1 }
  0x85   : > { %1381 = dma.done.wait (%p1997_p7), %s236_s7, 2048  }
  0x86   : > { %1383 = vsyncadd (%p1997_p7), %s236_s7, 4294965248  ;;  %s1998_s4 = sld [smem:[#allocation13_spill]]  ;;  %s267_s8 = sand.u32 1, %s1394_s13  }
  0x87   : > { %s903_s28 = sshll.u32 %s267_s8, 7  ;;  %s1999_s1 = sld [smem:[#allocation21_spill]] }
  0x88   : > { %s1793_s5 = scalar_lea.vmem [#allocation8], %s903_s28  ;;  %s2000_s3 = sld [smem:[#allocation12_spill]] }
  0x8c   : > { %p273_p4 = scmp.lt.s32.totalorder %s1998_s4, 1 }
  0x8e   : > { %s2038_s4 = smov (!%p273_p4, %s1998_s4), 1  ;;  %p904_p12 = scmp.ne.s32.totalorder %s2000_s3, 0 }
  0x8f   : > { %s275_s21 = scalar_lea.vmem %s1999_s1, %s2038_s4  ;;  %v1459_v0 = vmov (!%p904_p12), 0.0  }
  0x90   : > { %281 = sbr.rel (%p904_p12) target bundleno = 152 (0x98), region = 44  ;;  %282 = vst [vmem:[#allocation2] sm:$0xff] (!%p904_p12), %v1459_v0  ;;  %283 = vst [vmem:[#allocation2 + $0x8] sm:$0xff] (!%p904_p12), %v1459_v0 }
  0x91   : > { %284 = vst [vmem:[#allocation2 + $0x10] sm:$0xff] (!%p904_p12), %v1459_v0  ;;  %285 = vst [vmem:[#allocation2 + $0x18] sm:$0xff] (!%p904_p12), %v1459_v0 }
  0x92   : > { %286 = vst [vmem:[#allocation2 + $0x20] sm:$0xff] (!%p904_p12), %v1459_v0  ;;  %287 = vst [vmem:[#allocation2 + $0x28] sm:$0xff] (!%p904_p12), %v1459_v0 }
  0x93   : > { %288 = vst [vmem:[#allocation2 + $0x30] sm:$0xff] (!%p904_p12), %v1459_v0  ;;  %289 = vst [vmem:[#allocation2 + $0x38] sm:$0xff] (!%p904_p12), %v1459_v0 }
  0x94   : > { %290 = vst [vmem:[#allocation2 + $0x40] sm:$0xff] (!%p904_p12), %v1459_v0  ;;  %291 = vst [vmem:[#allocation2 + $0x48] sm:$0xff] (!%p904_p12), %v1459_v0 }
  0x95   : > { %292 = vst [vmem:[#allocation2 + $0x50] sm:$0xff] (!%p904_p12), %v1459_v0  ;;  %293 = vst [vmem:[#allocation2 + $0x58] sm:$0xff] (!%p904_p12), %v1459_v0 }
  0x96   : > { %294 = vst [vmem:[#allocation2 + $0x60] sm:$0xff] (!%p904_p12), %v1459_v0  ;;  %295 = vst [vmem:[#allocation2 + $0x68] sm:$0xff] (!%p904_p12), %v1459_v0 }
  0x97   : > { %296 = vst [vmem:[#allocation2 + $0x70] sm:$0xff] %v1459_v0  ;;  %297 = vst [vmem:[#allocation2 + $0x78] sm:$0xff] %v1459_v0 }
  0x98 PF: > { %v1184_v1 = vld [vmem:[%s1776_s15 + $0x40] sm:$0xff]   ;;  %v1186_v3 = vld [vmem:[%s1776_s15 + $0x48] sm:$0xff]   ;;  %v1188_v5 = vld [vmem:[%s1776_s15 + $0x50] sm:$0xff]   ;;  %s2001_s29 = sld [smem:[#allocation12_spill]] }
  0x99   : > { %v1185_v2 = vld [vmem:[%s1776_s15] sm:$0xff]   ;;  %948 = vmatprep.subr.bf16.mxu0 %v1184_v1  ;;  %1012 = vmatprep.subr.bf16.mxu1 %v1184_v1  ;;  %v1187_v4 = vld [vmem:[%s1776_s15 + $0x8] sm:$0xff]   ;;  %v1189_v6 = vld [vmem:[%s1776_s15 + $0x10] sm:$0xff]  }
  0x9a   : > { %949 = vmatpush3.bf16.msra.mxu0 %v1185_v2  ;;  %1020 = vmatpush3.bf16.msra.mxu1 %v1185_v2  ;;  %v1190_v7 = vld [vmem:[%s1776_s15 + $0x58] sm:$0xff]   ;;  %v1192_v9 = vld [vmem:[%s1776_s15 + $0x60] sm:$0xff]   ;;  %v1194_v11 = vld [vmem:[%s1776_s15 + $0x68] sm:$0xff]  }
  0x9b   : > { %950 = vmatprep.subr.bf16.mxu0 %v1186_v3  ;;  %1013 = vmatprep.subr.bf16.mxu1 %v1186_v3  ;;  %v1191_v8 = vld [vmem:[%s1776_s15 + $0x18] sm:$0xff]   ;;  %v1193_v10 = vld [vmem:[%s1776_s15 + $0x20] sm:$0xff]   ;;  %v1195_v14 = vld [vmem:[%s1776_s15 + $0x28] sm:$0xff]  }
  0x9c   : > { %v1202_v12 = vld [vmem:[%s1769_s6 + $0x4] ss:$8 sps:$4 sm:$0xff]   ;;  %v1196_v15 = vld [vmem:[%s1776_s15 + $0x70] sm:$0xff]   ;;  %v1198_v17 = vld [vmem:[%s1776_s15 + $0x78] sm:$0xff]  }
  0x9d   : > { %v1205_v13 = vld [vmem:[%s1769_s6 + $0x44] ss:$8 sps:$4 sm:$0xff]   ;;  %570 = vmatprep.mubr.bf16.mxu0 %v1202_v12  ;;  %v1197_v16 = vld [vmem:[%s1776_s15 + $0x30] sm:$0xff]   ;;  %v1199_v18 = vld [vmem:[%s1776_s15 + $0x38] sm:$0xff]  }
  0x9e   : > { %951 = vmatpush3.bf16.msra.mxu0 %v1187_v4  ;;  %1021 = vmatpush3.bf16.msra.mxu1 %v1187_v4  ;;  %v1200_v19 = vld [vmem:[%s1769_s6] ss:$8 sps:$4 sm:$0xff]   ;;  %v1206_v21 = vld [vmem:[%s1769_s6 + $0x14] ss:$8 sps:$4 sm:$0xff]   ;;  %v1210_v23 = vld [vmem:[%s1769_s6 + $0x10] ss:$8 sps:$4 sm:$0xff]  }
  0x9f   : > { %952 = vmatprep.subr.bf16.mxu0 %v1188_v5  ;;  %1014 = vmatprep.subr.bf16.mxu1 %v1188_v5  ;;  %v1203_v20 = vld [vmem:[%s1769_s6 + $0x40] ss:$8 sps:$4 sm:$0xff]   ;;  %v1208_v22 = vld [vmem:[%s1769_s6 + $0x54] ss:$8 sps:$4 sm:$0xff]   ;;  %v1211_v24 = vld [vmem:[%s1769_s6 + $0x50] ss:$8 sps:$4 sm:$0xff]  }
  0xa0   : > { %602 = vmatprep.mubr.bf16.mxu1 %v1205_v13  ;;  %v1212_v25 = vld [vmem:[%s1769_s6 + $0x24] ss:$8 sps:$4 sm:$0xff]   ;;  %v1216_v27 = vld [vmem:[%s1769_s6 + $0x20] ss:$8 sps:$4 sm:$0xff]   ;;  %v1218_v29 = vld [vmem:[%s1769_s6 + $0x34] ss:$8 sps:$4 sm:$0xff]  }
  0xa1   : > { %v1214_v26 = vld [vmem:[%s1769_s6 + $0x64] ss:$8 sps:$4 sm:$0xff]   ;;  %v1217_v28 = vld [vmem:[%s1769_s6 + $0x60] ss:$8 sps:$4 sm:$0xff]   ;;  %v1220_v30 = vld [vmem:[%s1769_s6 + $0x74] ss:$8 sps:$4 sm:$0xff]  }
  0xa2   : > { %953 = vmatpush3.bf16.msra.mxu0 %v1189_v6  ;;  %1022 = vmatpush3.bf16.msra.mxu1 %v1189_v6  ;;  %v1222_v31 = vld [vmem:[%s1769_s6 + $0x30] ss:$8 sps:$4 sm:$0xff]   ;;  %v298_v35 = vld [vmem:[#allocation2] sm:$0xff]  ;;  %v299_v43 = vld [vmem:[#allocation2 + $0x8] sm:$0xff]  ;;  %p937_p13 = scmp.ne.s32.totalorder %s2001_s29, 1 }
  0xa3   : > { %954 = vmatprep.subr.bf16.mxu0 %v1190_v7  ;;  %1015 = vmatprep.subr.bf16.mxu1 %v1190_v7  ;;  %v1223_v32 = vld [vmem:[%s1769_s6 + $0x70] ss:$8 sps:$4 sm:$0xff]   ;;  %v306_v37 = vld [vmem:[#allocation2 + $0x40] sm:$0xff]  ;;  %v307_v45 = vld [vmem:[#allocation2 + $0x48] sm:$0xff] }
  0xa4   : > { %v300_v55 = vld [vmem:[#allocation2 + $0x10] sm:$0xff]  ;;  %v301_v63 = vld [vmem:[#allocation2 + $0x18] sm:$0xff]  ;;  %v310_v13 = vld [vmem:[#allocation2 + $0x60] sm:$0xff] }
  0xa5   : > { %v308_v57 = vld [vmem:[#allocation2 + $0x50] sm:$0xff]  ;;  %v309_v1 = vld [vmem:[#allocation2 + $0x58] sm:$0xff] }
  0xa6   : > { %955 = vmatpush3.bf16.msra.mxu0 %v1191_v8  ;;  %1023 = vmatpush3.bf16.msra.mxu1 %v1191_v8 }
  0xa7   : > { %956 = vmatprep.subr.bf16.mxu0 %v1192_v9  ;;  %1016 = vmatprep.subr.bf16.mxu1 %v1192_v9 }
  0xaa   : > { %957 = vmatpush3.bf16.msra.mxu0 %v1193_v10  ;;  %1024 = vmatpush3.bf16.msra.mxu1 %v1193_v10 }
  0xab   : > { %958 = vmatprep.subr.bf16.mxu0 %v1194_v11  ;;  %1017 = vmatprep.subr.bf16.mxu1 %v1194_v11  ;;  %v302_v11 = vld [vmem:[#allocation2 + $0x20] sm:$0xff] }
  0xae   : > { %959 = vmatpush3.bf16.msra.mxu0 %v1195_v14  ;;  %1025 = vmatpush3.bf16.msra.mxu1 %v1195_v14 }
  0xaf   : > { %960 = vmatprep.subr.bf16.mxu0 %v1196_v15  ;;  %1018 = vmatprep.subr.bf16.mxu1 %v1196_v15 }
  0xb2   : > { %961 = vmatpush3.bf16.msra.mxu0 %v1197_v16  ;;  %1026 = vmatpush3.bf16.msra.mxu1 %v1197_v16 }
  0xb3   : > { %962 = vmatprep.subr.bf16.mxu0 %v1198_v17  ;;  %1019 = vmatprep.subr.bf16.mxu1 %v1198_v17 }
  0xb6   : > { %963 = vmatpush3.bf16.msra.mxu0 %v1199_v18  ;;  %1027 = vmatpush3.bf16.msra.mxu1 %v1199_v18 }
  0xb9   : > { %571 = vmatmul.mubr.bf16.vlgmr.msra.gmra.mrb[0].mxu0 %v1200_v19  ;;  %603 = vmatmul.mubr.bf16.vlgmr.msra.gmra.mrb[0].mxu1 %v1203_v20  ;;  %v303_v19 = vld [vmem:[#allocation2 + $0x28] sm:$0xff] }
  0xba   : > { %578 = vmatprep.mubr.bf16.mxu0 %v1206_v21  ;;  %610 = vmatprep.mubr.bf16.mxu1 %v1208_v22  ;;  %v311_v21 = vld [vmem:[#allocation2 + $0x68] sm:$0xff] }
  0xc1   : > { %579 = vmatmul.mubr.bf16.gmra.mrb[4].mxu0 %v1210_v23  ;;  %611 = vmatmul.mubr.bf16.gmra.mrb[4].mxu1 %v1211_v24 }
  0xc2   : > { %586 = vmatprep.mubr.bf16.mxu0 %v1212_v25  ;;  %618 = vmatprep.mubr.bf16.mxu1 %v1214_v26 }
  0xc9   : > { %587 = vmatmul.mubr.bf16.gmra.mrb[8].mxu0 %v1216_v27  ;;  %619 = vmatmul.mubr.bf16.gmra.mrb[8].mxu1 %v1217_v28 }
  0xca   : > { %594 = vmatprep.mubr.bf16.mxu0 %v1218_v29  ;;  %626 = vmatprep.mubr.bf16.mxu1 %v1220_v30 }
  0xd1   : > { %595 = vmatmul.mubr.bf16.gmra.mrb[12].mxu0 %v1222_v31  ;;  %627 = vmatmul.mubr.bf16.gmra.mrb[12].mxu1 %v1223_v32  ;;  %v304_v31 = vld [vmem:[#allocation2 + $0x30] sm:$0xff] }
 0x18c   : > { %v964_v33 = vpop.f32.mrb[0].mxu0  ;;  %v988_v34 = vpop.f32.mrb[0].mxu1 }
 0x18d   : > { %v965_v36 = vpop.f32.mrb[1].mxu0  ;;  %v989_v38 = vpop.f32.mrb[1].mxu1 }
 0x18e   : > { %v966_v39 = vadd.f32 %v965_v36, %v964_v33  ;;  %v990_v40 = vadd.f32 %v989_v38, %v988_v34  ;;  %v967_v41 = vpop.f32.mrb[2].mxu0  ;;  %v991_v42 = vpop.f32.mrb[2].mxu1  ;;  %v312_v33 = vld [vmem:[#allocation2 + $0x70] sm:$0xff] }
 0x18f   : > { %v968_v44 = vpop.f32.mrb[3].mxu0  ;;  %v992_v46 = vpop.f32.mrb[3].mxu1 }
 0x190   : > { %v635_v47 = vadd.f32 %v966_v39, %v298_v35  ;;  %v643_v48 = vadd.f32 %v990_v40, %v306_v37  ;;  %v969_v49 = vadd.f32 %v968_v44, %v967_v41  ;;  %v993_v50 = vadd.f32 %v992_v46, %v991_v42  ;;  %v305_v39 = vld [vmem:[#allocation2 + $0x38] sm:$0xff] }
 0x191   : > { %v313_v41 = vld [vmem:[#allocation2 + $0x78] sm:$0xff] }
 0x192   : > { %651 = vst [vmem:[#allocation2] sm:$0xff] %v635_v47  ;;  %659 = vst [vmem:[#allocation2 + $0x40] sm:$0xff] %v643_v48  ;;  %v636_v51 = vadd.f32 %v969_v49, %v299_v43  ;;  %v644_v52 = vadd.f32 %v993_v50, %v307_v45  ;;  %v938_v50 = vld [vmem:[%s275_s21] ss:$0 sm:$0xff] (!%p937_p13) }
 0x194   : > { %652 = vst [vmem:[#allocation2 + $0x8] sm:$0xff] %v636_v51  ;;  %660 = vst [vmem:[#allocation2 + $0x48] sm:$0xff] %v644_v52  ;;  %v970_v53 = vpop.f32.mrb[4].mxu0  ;;  %v994_v54 = vpop.f32.mrb[4].mxu1 }
 0x195   : > { %v971_v56 = vpop.f32.mrb[5].mxu0  ;;  %v995_v58 = vpop.f32.mrb[5].mxu1 }
 0x196   : > { %v972_v59 = vadd.f32 %v971_v56, %v970_v53  ;;  %v996_v60 = vadd.f32 %v995_v58, %v994_v54  ;;  %v973_v61 = vpop.f32.mrb[6].mxu0  ;;  %v997_v62 = vpop.f32.mrb[6].mxu1 }
 0x197   : > { %v974_v0 = vpop.f32.mrb[7].mxu0  ;;  %v998_v2 = vpop.f32.mrb[7].mxu1 }
 0x198   : > { %v637_v3 = vadd.f32 %v972_v59, %v300_v55  ;;  %v645_v4 = vadd.f32 %v996_v60, %v308_v57  ;;  %v975_v5 = vadd.f32 %v974_v0, %v973_v61  ;;  %v999_v6 = vadd.f32 %v998_v2, %v997_v62 }
 0x199   : > { %v671_v49 = vld [vmem:[#allocation2] sm:$0xff] (!%p937_p13) }
 0x19a   : > { %653 = vst [vmem:[#allocation2 + $0x10] sm:$0xff] %v637_v3  ;;  %661 = vst [vmem:[#allocation2 + $0x50] sm:$0xff] %v645_v4  ;;  %v638_v7 = vadd.f32 %v975_v5, %v301_v63  ;;  %v646_v8 = vadd.f32 %v999_v6, %v309_v1  ;;  %v694_v52 = vadd.f32 (!%p937_p13), %v938_v50, %v671_v49  ;;  %v679_v3 = vld [vmem:[#allocation2 + $0x40] sm:$0xff] (!%p937_p13) }
 0x19b   : > { %v672_v51 = vld [vmem:[#allocation2 + $0x8] sm:$0xff] (!%p937_p13) }
 0x19c   : > { %654 = vst [vmem:[#allocation2 + $0x18] sm:$0xff] %v638_v7  ;;  %662 = vst [vmem:[#allocation2 + $0x58] sm:$0xff] %v646_v8  ;;  %v976_v9 = vpop.f32.mrb[8].mxu0  ;;  %v1000_v10 = vpop.f32.mrb[8].mxu1  ;;  %v695_v53 = vadd.f32 (!%p937_p13), %v938_v50, %v672_v51  ;;  %v710_v63 = vmax.f32 (!%p937_p13), %v694_v52, 0.0  ;;  %v680_v4 = vld [vmem:[#allocation2 + $0x48] sm:$0xff] (!%p937_p13) }
 0x19d   : > { %v977_v12 = vpop.f32.mrb[9].mxu0  ;;  %v1001_v14 = vpop.f32.mrb[9].mxu1 }
 0x19e   : > { %v978_v15 = vadd.f32 %v977_v12, %v976_v9  ;;  %v1002_v16 = vadd.f32 %v1001_v14, %v1000_v10  ;;  %v979_v17 = vpop.f32.mrb[10].mxu0  ;;  %v1003_v18 = vpop.f32.mrb[10].mxu1  ;;  %v711_v0 = vmax.f32 (!%p937_p13), %v695_v53, 0.0  ;;  %726 = vst [vmem:[%s1793_s5] sm:$0xff] (!%p937_p13), %v710_v63 }
 0x19f   : > { %v980_v20 = vpop.f32.mrb[11].mxu0  ;;  %v1004_v22 = vpop.f32.mrb[11].mxu1 }
 0x1a0   : > { %v639_v23 = vadd.f32 %v978_v15, %v302_v11  ;;  %v647_v24 = vadd.f32 %v1002_v16, %v310_v13  ;;  %v981_v25 = vadd.f32 %v980_v20, %v979_v17  ;;  %v1005_v26 = vadd.f32 %v1004_v22, %v1003_v18  ;;  %727 = vst [vmem:[%s1793_s5 + $0x8] sm:$0xff] (!%p937_p13), %v711_v0 }
 0x1a1   : > { %v673_v54 = vld [vmem:[#allocation2 + $0x10] sm:$0xff] (!%p937_p13)  ;;  %v702_v15 = vadd.f32 (!%p937_p13), %v938_v50, %v679_v3  ;;  %v703_v16 = vadd.f32 (!%p937_p13), %v938_v50, %v680_v4 }
 0x1a2   : > { %655 = vst [vmem:[#allocation2 + $0x20] sm:$0xff] %v639_v23  ;;  %663 = vst [vmem:[#allocation2 + $0x60] sm:$0xff] %v647_v24  ;;  %v640_v27 = vadd.f32 %v981_v25, %v303_v19  ;;  %v648_v28 = vadd.f32 %v1005_v26, %v311_v21  ;;  %v696_v57 = vadd.f32 (!%p937_p13), %v938_v50, %v673_v54  ;;  %v681_v5 = vld [vmem:[#allocation2 + $0x50] sm:$0xff] (!%p937_p13) }
 0x1a3   : > { %v674_v55 = vld [vmem:[#allocation2 + $0x18] sm:$0xff] (!%p937_p13)  ;;  %v704_v20 = vadd.f32 (!%p937_p13), %v938_v50, %v681_v5  ;;  %v718_v23 = vmax.f32 (!%p937_p13), %v702_v15, 0.0  ;;  %v719_v24 = vmax.f32 (!%p937_p13), %v703_v16, 0.0 }
 0x1a4   : > { %656 = vst [vmem:[#allocation2 + $0x28] sm:$0xff] %v640_v27  ;;  %664 = vst [vmem:[#allocation2 + $0x68] sm:$0xff] %v648_v28  ;;  %v982_v29 = vpop.f32.mrb[12].mxu0  ;;  %v1006_v30 = vpop.f32.mrb[12].mxu1  ;;  %v697_v58 = vadd.f32 (!%p937_p13), %v938_v50, %v674_v55  ;;  %v712_v6 = vmax.f32 (!%p937_p13), %v696_v57, 0.0  ;;  %v682_v10 = vld [vmem:[#allocation2 + $0x58] sm:$0xff] (!%p937_p13) }
 0x1a5   : > { %v983_v32 = vpop.f32.mrb[13].mxu0  ;;  %v1007_v34 = vpop.f32.mrb[13].mxu1  ;;  %v705_v21 = vadd.f32 (!%p937_p13), %v938_v50, %v682_v10  ;;  %v720_v27 = vmax.f32 (!%p937_p13), %v704_v20, 0.0  ;;  %734 = vst [vmem:[%s1793_s5 + $0x40] sm:$0xff] (!%p937_p13), %v718_v23  ;;  %735 = vst [vmem:[%s1793_s5 + $0x48] sm:$0xff] (!%p937_p13), %v719_v24 }
 0x1a6   : > { %v984_v35 = vadd.f32 %v983_v32, %v982_v29  ;;  %v1008_v36 = vadd.f32 %v1007_v34, %v1006_v30  ;;  %v985_v37 = vpop.f32.mrb[14].mxu0  ;;  %v1009_v38 = vpop.f32.mrb[14].mxu1  ;;  %670 = sbr.rel (%p937_p13) target bundleno = 442 (0x1ba), region = 48  ;;  %v713_v7 = vmax.f32 (!%p937_p13), %v697_v58, 0.0  ;;  %728 = vst [vmem:[%s1793_s5 + $0x10] sm:$0xff] (!%p937_p13), %v712_v6 }
 0x1a7   : > { %v986_v40 = vpop.f32.mrb[15].mxu0  ;;  %v1010_v42 = vpop.f32.mrb[15].mxu1  ;;  %v721_v28 = vmax.f32 (!%p937_p13), %v705_v21, 0.0  ;;  %736 = vst [vmem:[%s1793_s5 + $0x50] sm:$0xff] (!%p937_p13), %v720_v27 }
 0x1a8   : > { %v641_v43 = vadd.f32 %v984_v35, %v304_v31  ;;  %v649_v44 = vadd.f32 %v1008_v36, %v312_v33  ;;  %v987_v45 = vadd.f32 %v986_v40, %v985_v37  ;;  %v1011_v46 = vadd.f32 %v1010_v42, %v1009_v38  ;;  %729 = vst [vmem:[%s1793_s5 + $0x18] sm:$0xff] (!%p937_p13), %v713_v7 }
 0x1a9   : > { %v675_v56 = vld [vmem:[#allocation2 + $0x20] sm:$0xff] (!%p937_p13)  ;;  %737 = vst [vmem:[%s1793_s5 + $0x58] sm:$0xff] (!%p937_p13), %v721_v28 }
 0x1aa   : > { %657 = vst [vmem:[#allocation2 + $0x30] sm:$0xff] %v641_v43  ;;  %665 = vst [vmem:[#allocation2 + $0x70] sm:$0xff] %v649_v44  ;;  %v642_v47 = vadd.f32 %v987_v45, %v305_v39  ;;  %v650_v48 = vadd.f32 %v1011_v46, %v313_v41  ;;  %v698_v59 = vadd.f32 (!%p937_p13), %v938_v50, %v675_v56  ;;  %v683_v11 = vld [vmem:[#allocation2 + $0x60] sm:$0xff] (!%p937_p13) }
 0x1ab   : > { %v676_v60 = vld [vmem:[#allocation2 + $0x28] sm:$0xff] (!%p937_p13)  ;;  %v706_v22 = vadd.f32 (!%p937_p13), %v938_v50, %v683_v11 }
 0x1ac   : > { %658 = vst [vmem:[#allocation2 + $0x38] sm:$0xff] %v642_v47  ;;  %666 = vst [vmem:[#allocation2 + $0x78] sm:$0xff] %v650_v48  ;;  %v699_v1 = vadd.f32 (!%p937_p13), %v938_v50, %v676_v60  ;;  %v714_v8 = vmax.f32 (!%p937_p13), %v698_v59, 0.0  ;;  %v684_v12 = vld [vmem:[#allocation2 + $0x68] sm:$0xff] (!%p937_p13) }
 0x1ad   : > { %v707_v25 = vadd.f32 %v938_v50, %v684_v12  ;;  %v722_v29 = vmax.f32 %v706_v22, 0.0 }
 0x1ae   : > { %v715_v13 = vmax.f32 %v699_v1, 0.0  ;;  %730 = vst [vmem:[%s1793_s5 + $0x20] sm:$0xff] %v714_v8 }
 0x1af   : > { %v723_v31 = vmax.f32 %v707_v25, 0.0  ;;  %738 = vst [vmem:[%s1793_s5 + $0x60] sm:$0xff] %v722_v29 }
 0x1b0   : > { %731 = vst [vmem:[%s1793_s5 + $0x28] sm:$0xff] %v715_v13 }
 0x1b1   : > { %v677_v61 = vld [vmem:[#allocation2 + $0x30] sm:$0xff]  ;;  %739 = vst [vmem:[%s1793_s5 + $0x68] sm:$0xff] %v723_v31 }
 0x1b2   : > { %v700_v2 = vadd.f32 %v938_v50, %v677_v61  ;;  %v685_v17 = vld [vmem:[#allocation2 + $0x70] sm:$0xff] }
 0x1b3   : > { %v678_v62 = vld [vmem:[#allocation2 + $0x38] sm:$0xff]  ;;  %v708_v26 = vadd.f32 %v938_v50, %v685_v17 }
 0x1b4   : > { %v701_v9 = vadd.f32 %v938_v50, %v678_v62  ;;  %v716_v14 = vmax.f32 %v700_v2, 0.0  ;;  %v686_v18 = vld [vmem:[#allocation2 + $0x78] sm:$0xff] }
 0x1b5   : > { %v709_v30 = vadd.f32 %v938_v50, %v686_v18  ;;  %v724_v32 = vmax.f32 %v708_v26, 0.0 }
 0x1b6   : > { %v717_v19 = vmax.f32 %v701_v9, 0.0  ;;  %732 = vst [vmem:[%s1793_s5 + $0x30] sm:$0xff] %v716_v14 }
 0x1b7   : > { %v725_v33 = vmax.f32 %v709_v30, 0.0  ;;  %740 = vst [vmem:[%s1793_s5 + $0x70] sm:$0xff] %v724_v32 }
 0x1b8   : > { %733 = vst [vmem:[%s1793_s5 + $0x38] sm:$0xff] %v717_v19 }
 0x1b9   : > { %741 = vst [vmem:[%s1793_s5 + $0x78] sm:$0xff] %v725_v33 }
 0x1ba PF: > { %s2003_s7 = sld [smem:[#allocation14_spill]]  ;;  %s2004_s15 = sld [smem:[#allocation13_spill]] }
 0x1bb   : > { %s758_s30 = sshll.u32 %s1793_s5, 4  ;;  %s2005_s3 = sld [smem:[#allocation22_spill]]  ;;  %s1853_s30 = int_to_ptr.vmem [resolvable:$true] %s758_s30 }
 0x1bc   : > { %s1862_s9 = scalar_lea.sflag [#allocation5], %s267_s8  ;;  %s1284_s6 = scalar_lea.vmem %s1853_s30, 2048 }
 0x1bd   : > { %p1285_p5 = scmp.ne.s32.totalorder %s1853_s30, %s1284_s6  ;;  %p2006_p6 = scmp.ne.s32.totalorder %s1988_s2, 0 }
 0x1be   : > { %s1460_s5 = smov [#allocation8]  }
 0x1bf   : > { %p1286_p9 = pnand %p1285_p5, %p2006_p6  ;;  %s1288_s10 = sshll.u32 %s1460_s5, 4  ;;  %s1289_s10 = int_to_ptr.vmem [resolvable:$false] %s1288_s10 }
 0x1c0   : > { %s947_s4 = sshll.u32 %s2003_s7, 5  ;;  %s1290_s7 = scalar_lea.vmem %s1289_s10, 4096 }
 0x1c1   : > { %s755_s28 = sadd.s32 %s2004_s15, %s947_s4  ;;  %p1287_p0 = pneg %p1286_p9 }
 0x1c2   : > { %s942_s23 = sshll.u32 %s755_s28, 7  ;;  %p1291_p3 = scmp.lt.s32.totalorder %s1853_s30, %s1289_s10 }
 0x1c3   : > { %s1858_s29 = scalar_lea.hbm %s2005_s3, %s942_s23  ;;  %p1292_p2 = scmp.lt.s32.totalorder %s1290_s7, %s1284_s6 }
 0x1c5   : > { %p1293_p1 = por %p1292_p2, %p1291_p3 }
 0x1c7   : > { %p1294_p8 = pnand %p1293_p1, %p1287_p0 }
 0x1c9   : > { %1297 = shalt.err (!%p1294_p8)
}
 0x1ca   : > { %s1298_s8 = scalar_lea.hbm %s1858_s29, 2048  ;;  %s1302_s28 = scalar_lea.hbm %s2005_s3, 8192 }
 0x1cb   : > { %p1299_p10 = scmp.ne.s32.totalorder %s1858_s29, %s1298_s8  ;;  %p1303_p4 = scmp.lt.u32.totalorder %s1858_s29, %s2005_s3 }
 0x1cc   : > { %p1304_p12 = scmp.lt.u32.totalorder %s1302_s28, %s1298_s8  ;;  %p1306_p5 = scmp.lt.u32.totalorder %s1298_s8, %s1858_s29 }
 0x1cd   : > { %p1300_p11 = pnand %p1299_p10, %p2006_p6 }
 0x1ce   : > { %p1305_p13 = por %p1304_p12, %p1303_p4 }
 0x1cf   : > { %p1301_p7 = pneg %p1300_p11 }
 0x1d0   : > { %p1307_p9 = por %p1306_p5, %p1305_p13 }
 0x1d2   : > { %p1308_p0 = pnand %p1307_p9, %p1301_p7 }
 0x1d4   : > { %1311 = shalt.err (!%p1308_p0)
}
 0x1d5   : > { %s1461_s21 = smov 128   ;;  %s1462_s6 = smov 256  }
 0x1d6   : > { %s1463_s5 = smov 8  }
 0x1d7   : > { %1032 = dma.vmem_to_hbm [thread:$0]  (%p2006_p6), %s1853_s30, 2048, %s1858_s29, %s1862_s9, %s1461_s21, %s1462_s6, %s1463_s5  }
 0x1d8 PF: > { %p1046_p3 = scmp.ge.s32.totalorder %s1450_s27, 2  ;;  %s773_s10 = sand.u32 1, %s1390_s12  }
 0x1d9   : > { %p2007_p2 = scmp.ne.s32.totalorder %s1990_s11, 0  ;;  %s774_s7 = scalar_lea.sflag [#allocation5], %s773_s10 }
 0x1db   : > { %p1042_p1 = pnand %p1046_p3, %p2007_p2 }
 0x1dd   : > { %1385 = dma.done.wait (!%p1042_p1), %s774_s7, 2048  }
 0x1de   : > { %1387 = vsyncadd (!%p1042_p1), %s774_s7, 4294965248  ;;  %s22_s27 = sadd.s32 1, %s1450_s27   ;;  %s2009_s2 = sld [smem:[#allocation15_spill]] }
 0x1df   : > { %p1891_p8 = scmp.ge.s32.totalorder %s22_s27, 10   ;;  %s2010_s11 = sld [smem:[#allocation17_spill]] }
 0x1e0   : > { %s2011_s30 = sld [smem:[#allocation18_spill]]  ;;  %s2012_s12 = smov %s1394_s13 }
 0x1e1   : > { %s2013_s13 = smov %s1398_s14  ;;  %s2014_s14 = smov %s1713_s0 }
 0x1e2   : > { %s2015_s15 = smov %s1406_s16  ;;  %s2016_s16 = smov %s1410_s17 }
 0x1e3   : > { %s2017_s17 = smov %s1694_s18  ;;  %s2018_s18 = smov %s1418_s19 }
 0x1e4   : > { %s2019_s19 = smov %s1422_s20  ;;  %s2020_s20 = smov %s1710_s22 }
 0x1e5   : > { %s2021_s21 = smov %s1438_s24  ;;  %s2022_s22 = smov %s1442_s25 }
 0x1e6   : > { %s2023_s23 = smov %s1446_s26  ;;  %s2024_s24 = smov %s2009_s2 }
 0x1e7   : > { %s2025_s25 = smov %s2010_s11  ;;  %s2026_s26 = smov %s2011_s30 }
 0x1e8   :  { %21 = sbr.rel (!%p1891_p8) target bundleno = 18 (0x12), region = 101 }
 0x1ef   :  { %779 = vsyncpa [#allocation4], 1 }
 0x1f0   :  { %781 = vsyncpa [#allocation4 + $0x1], 1 }
 0x1f1   :  { %782 = vsyncpa [#allocation7], 1 }
 0x1f2   :  { %784 = vsyncpa [#allocation7 + $0x1], 1 }
 0x1f3   :  { %785 = vsyncpa [#allocation5], 1 }
 0x1f4   :  { %787 = vsyncpa [#allocation5 + $0x1], 1 }

</bundles_post_ra>
